<compile_context>
chip_gen: v7x
topology: tpu7x:2x2x1
jax: 0.10.0
libtpu: 0.0.40
codegen_flags: <defaults>
</compile_context>

<pallas_src>
import functools

import jax
import jax.numpy as jnp
from jax.experimental import pallas as pl
from jax.experimental.pallas import tpu as pltpu

HIDDEN = 256          # MLP hidden width (matches the PyTorch module)
OUT_PAD = 128         # lane-dense padded width of the final layer output
K_PAD = 8             # sublane-aligned padded state feature width
MAX_TB = 2048         # per-tile batch cap (v5e/v6e sweet spot)
MEGACORE_MIN_B = 512  # above this, force an even number (>=2) of grid steps (v7x)


def _round_up(x, m):
    return (x + m - 1) // m * m


def _cdiv(a, b):
    return -(-a // b)


def _choose_batch_tile(B):
    """Balanced batch tile.

    - n_tiles = cdiv(B, MAX_TB), bumped to an even >= 2 when B > 512 so the
      'parallel' batch axis actually splits across v7x's two TensorCores.
    - TB = round_up(cdiv(B, n_tiles), 8): tiles stay balanced, so awkward B
      (e.g. 1100) no longer pads to ~2x the work.
    """
    n_tiles = _cdiv(B, MAX_TB)
    if B > MEGACORE_MIN_B:
        n_tiles = max(n_tiles, 2)
    if n_tiles > 1 and n_tiles % 2:
        n_tiles += 1
    return _round_up(_cdiv(B, n_tiles), 8)


def _actor_kernel(x_ref, w1_ref, b1_ref, w2_ref, b2_ref, w3_ref, b3_ref,
                  mask_ref, out_ref):
    # First layer: f32 x f32 (K=8 -> negligible MXU work, keeps raw state
    # observations un-truncated).  Accumulation is f32 everywhere.
    x = x_ref[...]
    h1 = jnp.dot(x, w1_ref[...], preferred_element_type=jnp.float32) + b1_ref[...]
    h1 = jnp.maximum(h1, 0.0).astype(jnp.bfloat16)

    h2 = jnp.dot(h1, w2_ref[...], preferred_element_type=jnp.float32) + b2_ref[...]
    h2 = jnp.maximum(h2, 0.0).astype(jnp.bfloat16)

    out = jnp.dot(h2, w3_ref[...], preferred_element_type=jnp.float32) + b3_ref[...]

    # Lane layout of `out`: [0:a) mean | [a:2a) log_std | [2a:OUT_PAD) zero pad.
    # clip+exp is evaluated on every lane (EUP slot, effectively free); this is
    # SAFE on the discarded mean/pad lanes because clip bounds the exp argument
    # to [-20, 2] (no overflow/NaN).  Do not "fix" by masking before the exp.
    std_vals = jnp.exp(jnp.clip(out, -20.0, 2.0))
    std_lane = jnp.broadcast_to(mask_ref[...], out.shape) != 0.0
    out_ref[...] = jnp.where(std_lane, std_vals, out).astype(out_ref.dtype)


@functools.partial(jax.jit, static_argnames=("action_dim",))
def actor_forward(state, params, action_dim):
    """Returns (mean, std) exactly like Actor.forward."""
    w1, b1, w2, b2, w3, b3 = params
    B, sd = state.shape

    # Pad state features to a sublane-aligned width of 8.
    if sd < K_PAD:
        state = jnp.pad(state, ((0, 0), (0, K_PAD - sd)))

    TB = _choose_batch_tile(B)
    B_pad = _round_up(B, TB)
    if B_pad != B:
        state = jnp.pad(state, ((0, B_pad - B), (0, 0)))

    # Precomputed std-lane selector (constant-folded; avoids per-step iota).
    lane = jnp.arange(OUT_PAD)
    std_mask = ((lane >= action_dim) & (lane < 2 * action_dim)
                ).astype(jnp.float32)[None, :]

    flops = 2 * B_pad * (K_PAD * HIDDEN + HIDDEN * HIDDEN + HIDDEN * OUT_PAD)
    resident_bytes = sum(int(a.size) * a.dtype.itemsize
                         for a in (w1, b1, w2, b2, w3, b3)) + OUT_PAD * 4
    bytes_accessed = (B_pad * K_PAD * 4          # state in
                      + resident_bytes           # weights / biases / mask
                      + B_pad * OUT_PAD * 4)     # f32 output slab

    # Footprint-derived scoped-VMEM limit (2x margin, capped at 32 MiB):
    # double-buffered streamed tiles + resident operands + activation temps.
    pipeline_bytes = 2 * (TB * K_PAD * 4 + TB * OUT_PAD * 4) + 2 * resident_bytes
    act_bytes = 4 * TB * HIDDEN * 4              # generous h1/h2 f32+bf16 temps
    vmem_limit = int(min(32 << 20, max(8 << 20, 2 * (pipeline_bytes + act_bytes))))

    out = pl.pallas_call(
        _actor_kernel,
        out_shape=jax.ShapeDtypeStruct((B_pad, OUT_PAD), jnp.float32),
        grid_spec=pltpu.PrefetchScalarGridSpec(
            num_scalar_prefetch=0,
            grid=(B_pad // TB,),
            in_specs=[
                pl.BlockSpec((TB, K_PAD), lambda i: (i, 0)),        # state tile
                pl.BlockSpec((K_PAD, HIDDEN), lambda i: (0, 0)),    # W1 (f32, resident)
                pl.BlockSpec((1, HIDDEN), lambda i: (0, 0)),        # b1
                pl.BlockSpec((HIDDEN, HIDDEN), lambda i: (0, 0)),   # W2 (bf16, resident)
                pl.BlockSpec((1, HIDDEN), lambda i: (0, 0)),        # b2
                pl.BlockSpec((HIDDEN, OUT_PAD), lambda i: (0, 0)),  # W3 (bf16, padded)
                pl.BlockSpec((1, OUT_PAD), lambda i: (0, 0)),       # b3 (padded)
                pl.BlockSpec((1, OUT_PAD), lambda i: (0, 0)),       # std-lane mask
            ],
            out_specs=pl.BlockSpec((TB, OUT_PAD), lambda i: (i, 0)),
        ),
        compiler_params=pltpu.CompilerParams(
            dimension_semantics=("parallel",),
            vmem_limit_bytes=vmem_limit,
        ),
        cost_estimate=pl.CostEstimate(
            flops=flops,
            transcendentals=B_pad * OUT_PAD,
            bytes_accessed=bytes_accessed,
        ),
    )(state, w1, b1, w2, b2, w3, b3, std_mask)

    # Layout plumbing only: slice mean / std out of the lane-dense slab.
    mean = out[:B, :action_dim]
    std = out[:B, action_dim:2 * action_dim]
    return mean, std


def init_actor_params(key, state_dim, action_dim):
    """Deterministic init mirroring MLP._init_weights (orthogonal W, zero b).

    Weights are returned transposed to [in_dim, out_dim] and zero-padded to the
    kernel layout (K_PAD input features, OUT_PAD output lanes).  W1 stays f32
    (first-layer LHS is f32); W2/W3 are bf16 for the MXU.  Biases stay f32.
    """
    k1, k2, k3 = jax.random.split(key, 3)
    ortho = jax.nn.initializers.orthogonal(scale=1.0)

    # PyTorch Linear weight is [out, in]; orthogonal_ applies to that shape.
    w1 = ortho(k1, (HIDDEN, state_dim), jnp.float32).T           # [state_dim, 256]
    w2 = ortho(k2, (HIDDEN, HIDDEN), jnp.float32).T              # [256, 256]
    w3 = ortho(k3, (action_dim * 2, HIDDEN), jnp.float32).T      # [256, 2*action_dim]

    w1p = jnp.zeros((K_PAD, HIDDEN), jnp.float32).at[:state_dim, :].set(w1)
    w3p = jnp.zeros((HIDDEN, OUT_PAD), jnp.float32).at[:, :2 * action_dim].set(w3)

    b1 = jnp.zeros((1, HIDDEN), jnp.float32)
    b2 = jnp.zeros((1, HIDDEN), jnp.float32)
    b3 = jnp.zeros((1, OUT_PAD), jnp.float32)

    return (w1p, b1,
            w2.astype(jnp.bfloat16), b2,
            w3p.astype(jnp.bfloat16), b3)


def actor_forward_ref(state, params, action_dim):
    """Pure-JAX reference with the same f32-first-layer / bf16-hidden numerics."""
    w1, b1, w2, b2, w3, b3 = params
    sd = state.shape[1]
    x = jnp.pad(state, ((0, 0), (0, K_PAD - sd)))
    h1 = jnp.maximum(jnp.dot(x, w1, preferred_element_type=jnp.float32) + b1, 0.0)
    h2 = jnp.maximum(
        jnp.dot(h1.astype(jnp.bfloat16), w2, preferred_element_type=jnp.float32) + b2,
        0.0)
    out = jnp.dot(h2.astype(jnp.bfloat16), w3, preferred_element_type=jnp.float32) + b3
    a = action_dim
    mean = out[:, :a]
    log_std = jnp.clip(out[:, a:2 * a], -20.0, 2.0)
    return mean, jnp.exp(log_std)


if __name__ == "__main__":
    # Shapes consistent with the ball-plate SAC actor:
    # state_dim=6 (ball x, y, vx, vy, plate tilt x/y), action_dim=2.
    # NOTE: the small-B acting path (called once per env step) is pure launch
    # latency + ~200 KiB weight DMA; batching env steps or a cross-call weight
    # prefetch (P10) is the right fix there, not in-kernel tiling.
    # TODO(synk): sample()/select_action() (Normal rsample, tanh squash,
    # log_prob) are downstream of forward() and not part of this kernel.
    state_dim, action_dim = 6, 2

    key = jax.random.PRNGKey(0)
    pkey, skey = jax.random.split(key)
    params = init_actor_params(pkey, state_dim, action_dim)

    def _check(batch):
        s = jax.random.normal(jax.random.fold_in(skey, batch),
                              (batch, state_dim), jnp.float32)
        mean, std = actor_forward(s, params, action_dim)
        jax.block_until_ready((mean, std))
        mean_ref, std_ref = actor_forward_ref(s, params, action_dim)
        assert mean.shape == (batch, action_dim) and std.shape == (batch, action_dim)
        assert jnp.allclose(mean, mean_ref, atol=1e-3, rtol=1e-3)
        assert jnp.allclose(std, std_ref, atol=1e-3, rtol=1e-3)
        assert bool(jnp.all(std > 0.0))

    _check(8)     # single-tile acting-sized batch
    _check(600)   # multi-tile path: 2 balanced grid steps (megacore split on v7x)

    print("KERNEL_OK")
</pallas_src>

<mosaic_0001>
module attributes {stable_mosaic.version = 11 : i64} {
  func.func @_actor_kernel(%arg0: i32, %arg1: memref<8x8xf32, #tpu.memory_space<vmem>>, %arg2: memref<8x256xf32, #tpu.memory_space<vmem>>, %arg3: memref<1x256xf32, #tpu.memory_space<vmem>>, %arg4: memref<256x256xbf16, #tpu.memory_space<vmem>>, %arg5: memref<1x256xf32, #tpu.memory_space<vmem>>, %arg6: memref<256x128xbf16, #tpu.memory_space<vmem>>, %arg7: memref<1x128xf32, #tpu.memory_space<vmem>>, %arg8: memref<1x128xf32, #tpu.memory_space<vmem>>, %arg9: memref<8x128xf32, #tpu.memory_space<vmem>>) attributes {dimension_semantics = [#tpu.dimension_semantics<parallel>], iteration_bounds = array<i64: 1>, scalar_prefetch = 0 : i64, scratch_operands = 0 : i64, tpu.core_type = #tpu.core_type<tc>, window_params = [{transform_indices = @transform_0, window_bounds = array<i64: 8, 8>}, {pipeline_mode = #tpu.pipeline_mode<synchronous>, transform_indices = @transform_1, window_bounds = array<i64: 8, 256>}, {pipeline_mode = #tpu.pipeline_mode<synchronous>, transform_indices = @transform_2, window_bounds = array<i64: 1, 256>}, {pipeline_mode = #tpu.pipeline_mode<synchronous>, transform_indices = @transform_3, window_bounds = array<i64: 256, 256>}, {pipeline_mode = #tpu.pipeline_mode<synchronous>, transform_indices = @transform_4, window_bounds = array<i64: 1, 256>}, {pipeline_mode = #tpu.pipeline_mode<synchronous>, transform_indices = @transform_5, window_bounds = array<i64: 256, 128>}, {pipeline_mode = #tpu.pipeline_mode<synchronous>, transform_indices = @transform_6, window_bounds = array<i64: 1, 128>}, {pipeline_mode = #tpu.pipeline_mode<synchronous>, transform_indices = @transform_7, window_bounds = array<i64: 1, 128>}, {transform_indices = @transform_8, window_bounds = array<i64: 8, 128>}]} {
    %c0 = arith.constant 0 : index
    %c0_0 = arith.constant 0 : index
    %0 = vector.load %arg1[%c0, %c0_0] : memref<8x8xf32, #tpu.memory_space<vmem>>, vector<8x8xf32>
    %c0_1 = arith.constant 0 : index
    %c0_2 = arith.constant 0 : index
    %1 = vector.load %arg2[%c0_1, %c0_2] : memref<8x256xf32, #tpu.memory_space<vmem>>, vector<8x256xf32>
    %cst = arith.constant dense<0.000000e+00> : vector<8x256xf32>
    %2 = tpu.matmul %0, %1, %cst {dimension_numbers = #tpu.dot_dimension_numbers<[1], [0], [0], [1], [0, 0, 1, 1], [], []>} : vector<8x8xf32>, vector<8x256xf32>, vector<8x256xf32> -> vector<8x256xf32>
    %c0_3 = arith.constant 0 : index
    %c0_4 = arith.constant 0 : index
    %3 = vector.load %arg3[%c0_3, %c0_4] : memref<1x256xf32, #tpu.memory_space<vmem>>, vector<1x256xf32>
    %4 = vector.broadcast %3 : vector<1x256xf32> to vector<8x256xf32>
    %5 = arith.addf %2, %4 : vector<8x256xf32>
    %cst_5 = arith.constant 0.000000e+00 : f32
    %6 = vector.broadcast %cst_5 : f32 to vector<8x256xf32>
    %7 = arith.maximumf %5, %6 : vector<8x256xf32>
    %8 = arith.truncf %7 : vector<8x256xf32> to vector<8x256xbf16>
    %c0_6 = arith.constant 0 : index
    %c0_7 = arith.constant 0 : index
    %9 = vector.load %arg4[%c0_6, %c0_7] : memref<256x256xbf16, #tpu.memory_space<vmem>>, vector<256x256xbf16>
    %cst_8 = arith.constant dense<0.000000e+00> : vector<8x256xf32>
    %10 = tpu.matmul %8, %9, %cst_8 {dimension_numbers = #tpu.dot_dimension_numbers<[1], [0], [0], [1], [0, 0, 1, 1], [], []>} : vector<8x256xbf16>, vector<256x256xbf16>, vector<8x256xf32> -> vector<8x256xf32>
    %c0_9 = arith.constant 0 : index
    %c0_10 = arith.constant 0 : index
    %11 = vector.load %arg5[%c0_9, %c0_10] : memref<1x256xf32, #tpu.memory_space<vmem>>, vector<1x256xf32>
    %12 = vector.broadcast %11 : vector<1x256xf32> to vector<8x256xf32>
    %13 = arith.addf %10, %12 : vector<8x256xf32>
    %cst_11 = arith.constant 0.000000e+00 : f32
    %14 = vector.broadcast %cst_11 : f32 to vector<8x256xf32>
    %15 = arith.maximumf %13, %14 : vector<8x256xf32>
    %16 = arith.truncf %15 : vector<8x256xf32> to vector<8x256xbf16>
    %c0_12 = arith.constant 0 : index
    %c0_13 = arith.constant 0 : index
    %17 = vector.load %arg6[%c0_12, %c0_13] : memref<256x128xbf16, #tpu.memory_space<vmem>>, vector<256x128xbf16>
    %cst_14 = arith.constant dense<0.000000e+00> : vector<8x128xf32>
    %18 = tpu.matmul %16, %17, %cst_14 {dimension_numbers = #tpu.dot_dimension_numbers<[1], [0], [0], [1], [0, 0, 1, 1], [], []>} : vector<8x256xbf16>, vector<256x128xbf16>, vector<8x128xf32> -> vector<8x128xf32>
    %c0_15 = arith.constant 0 : index
    %c0_16 = arith.constant 0 : index
    %19 = vector.load %arg7[%c0_15, %c0_16] : memref<1x128xf32, #tpu.memory_space<vmem>>, vector<1x128xf32>
    %20 = vector.broadcast %19 : vector<1x128xf32> to vector<8x128xf32>
    %21 = arith.addf %18, %20 : vector<8x128xf32>
    %cst_17 = arith.constant -2.000000e+01 : f32
    %cst_18 = arith.constant 2.000000e+00 : f32
    %22 = vector.broadcast %cst_17 : f32 to vector<8x128xf32>
    %23 = arith.maximumf %22, %21 : vector<8x128xf32>
    %24 = vector.broadcast %cst_18 : f32 to vector<8x128xf32>
    %25 = arith.minimumf %24, %23 : vector<8x128xf32>
    %26 = math.exp %25 : vector<8x128xf32>
    %c0_19 = arith.constant 0 : index
    %c0_20 = arith.constant 0 : index
    %27 = vector.load %arg8[%c0_19, %c0_20] : memref<1x128xf32, #tpu.memory_space<vmem>>, vector<1x128xf32>
    %28 = vector.shape_cast %27 : vector<1x128xf32> to vector<1x128xf32>
    %29 = vector.broadcast %28 : vector<1x128xf32> to vector<8x128xf32>
    %cst_21 = arith.constant 0.000000e+00 : f32
    %30 = vector.broadcast %cst_21 : f32 to vector<8x128xf32>
    %31 = arith.cmpf one, %29, %30 : vector<8x128xf32>
    %32 = arith.select %31, %26, %21 : vector<8x128xi1>, vector<8x128xf32>
    %c0_22 = arith.constant 0 : index
    %c0_23 = arith.constant 0 : index
    %33 = vector.load %arg9[%c0_22, %c0_23] : memref<8x128xf32, #tpu.memory_space<vmem>>, vector<8x128xf32>
    tpu.vector_store %arg9[%c0_22, %c0_23], %32 {strides = array<i32>} : memref<8x128xf32, #tpu.memory_space<vmem>>, vector<8x128xf32>,
    return
  }
  func.func @transform_0(%arg0: i32) -> (i32, i32) {
    %c0_i32 = arith.constant 0 : i32
    %c0_i32_0 = arith.constant 0 : i32
    return %arg0, %c0_i32 : i32, i32
  }
  func.func @transform_1(%arg0: i32) -> (i32, i32) {
    %c0_i32 = arith.constant 0 : i32
    %c0_i32_0 = arith.constant 0 : i32
    %c0_i32_1 = arith.constant 0 : i32
    return %c0_i32, %c0_i32_0 : i32, i32
  }
  func.func @transform_2(%arg0: i32) -> (i32, i32) {
    %c0_i32 = arith.constant 0 : i32
    %c0_i32_0 = arith.constant 0 : i32
    %c0_i32_1 = arith.constant 0 : i32
    return %c0_i32, %c0_i32_0 : i32, i32
  }
  func.func @transform_3(%arg0: i32) -> (i32, i32) {
    %c0_i32 = arith.constant 0 : i32
    %c0_i32_0 = arith.constant 0 : i32
    %c0_i32_1 = arith.constant 0 : i32
    return %c0_i32, %c0_i32_0 : i32, i32
  }
  func.func @transform_4(%arg0: i32) -> (i32, i32) {
    %c0_i32 = arith.constant 0 : i32
    %c0_i32_0 = arith.constant 0 : i32
    %c0_i32_1 = arith.constant 0 : i32
    return %c0_i32, %c0_i32_0 : i32, i32
  }
  func.func @transform_5(%arg0: i32) -> (i32, i32) {
    %c0_i32 = arith.constant 0 : i32
    %c0_i32_0 = arith.constant 0 : i32
    %c0_i32_1 = arith.constant 0 : i32
    return %c0_i32, %c0_i32_0 : i32, i32
  }
  func.func @transform_6(%arg0: i32) -> (i32, i32) {
    %c0_i32 = arith.constant 0 : i32
    %c0_i32_0 = arith.constant 0 : i32
    %c0_i32_1 = arith.constant 0 : i32
    return %c0_i32, %c0_i32_0 : i32, i32
  }
  func.func @transform_7(%arg0: i32) -> (i32, i32) {
    %c0_i32 = arith.constant 0 : i32
    %c0_i32_0 = arith.constant 0 : i32
    %c0_i32_1 = arith.constant 0 : i32
    return %c0_i32, %c0_i32_0 : i32, i32
  }
  func.func @transform_8(%arg0: i32) -> (i32, i32) {
    %c0_i32 = arith.constant 0 : i32
    %c0_i32_0 = arith.constant 0 : i32
    return %arg0, %c0_i32 : i32, i32
  }
}

</mosaic_0001>

<bundles_post_ra>
// kernel: actor_forward.1
= control target key start
LH: loop header
LB: loop body
LE: loop exit
PB: predicated region body
PF: predicated region fallthrough
CT: control target
= control target key end

     0   :  { %13 = vsyncpa [#allocation3], 0  ;;  %s890_s0 = inlined_call_operand.vmem [shape: f32[8,8], index: 0, kind: input, shape index: {}]   ;;  %s891_s1 = inlined_call_operand.vmem [shape: f32[8,256], index: 1, kind: input, shape index: {}]   ;;  %s892_s2 = inlined_call_operand.vmem [shape: f32[1,256], index: 2, kind: input, shape index: {}]   ;;  %s893_s3 = inlined_call_operand.hbm [shape: bf16[256,256], index: 3, kind: input, shape index: {}]   ;;  %s894_s4 = inlined_call_operand.vmem [shape: f32[1,256], index: 4, kind: input, shape index: {}]   ;;  %s895_s5 = inlined_call_operand.hbm [shape: bf16[256,128], index: 5, kind: input, shape index: {}]   ;;  %s896_s6 = inlined_call_operand.vmem [shape: f32[1,128], index: 6, kind: input, shape index: {}]   ;;  %s897_s7 = inlined_call_operand.vmem [shape: f32[1,128], index: 7, kind: input, shape index: {}]   ;;  %s898_s8 = inlined_call_operand.vmem [shape: f32[8,128], index: 8, kind: output, shape index: {}]  }
   0x1   :  { %14 = vsyncpa [#allocation5], 0  ;;  %s790_s27 = smov [#allocation2]   ;;  %s742_s9 = scalar_lea.hbm %s893_s3, 4096 }
   0x2   :  { %s26_s28 = sshll.u32 %s790_s27, 4  ;;  %p743_p0 = scmp.ne.s32.totalorder %s893_s3, %s742_s9  ;;  %s27_s28 = int_to_ptr.vmem [resolvable:$true] %s26_s28 }
   0x3   :  { %p746_p1 = scmp.lt.u32.totalorder %s742_s9, %s893_s3 }
   0x5   :  { %p748_p2 = pnand %p746_p1, %p743_p0 }
   0x7   :  { %751 = shalt.err (!%p748_p2)
}
   0x8   :  { %s752_s14 = scalar_lea.vmem %s27_s28, 4096  ;;  %p757_p4 = scmp.lt.s32.totalorder %s27_s28, %s27_s28 }
   0x9   :  { %p753_p3 = scmp.ne.s32.totalorder %s27_s28, %s752_s14  ;;  %p758_p5 = scmp.lt.s32.totalorder %s752_s14, %s752_s14 }
   0xb   :  { %p759_p6 = por %p758_p5, %p757_p4 }
   0xd   :  { %p760_p7 = pnand %p759_p6, %p753_p3 }
   0xf   :  { %763 = shalt.err (!%p760_p7)
}
  0x10   :  { %s791_s15 = smov 128   ;;  %s792_s16 = smov 8  }
  0x11   :  { %32 = dma.hbm_to_vmem [thread:$0]  %s893_s3, 4096, %s27_s28, [#allocation3], %s791_s15, %s791_s15, %s792_s16  }
  0x12   :  { %s793_s19 = smov [#allocation4]   ;;  %s764_s23 = scalar_lea.hbm %s895_s5, 2048 }
  0x13   :  { %s40_s20 = sshll.u32 %s793_s19, 4  ;;  %p765_p8 = scmp.ne.s32.totalorder %s895_s5, %s764_s23  ;;  %s41_s20 = int_to_ptr.vmem [resolvable:$true] %s40_s20 }
  0x14   :  { %p768_p9 = scmp.lt.u32.totalorder %s764_s23, %s895_s5 }
  0x16   :  { %p770_p10 = pnand %p768_p9, %p765_p8 }
  0x18   :  { %773 = shalt.err (!%p770_p10)
}
  0x19   :  { %s774_s29 = scalar_lea.vmem %s41_s20, 2048  ;;  %p779_p12 = scmp.lt.s32.totalorder %s41_s20, %s41_s20 }
  0x1a   :  { %p775_p11 = scmp.ne.s32.totalorder %s41_s20, %s774_s29  ;;  %p780_p13 = scmp.lt.s32.totalorder %s774_s29, %s774_s29 }
  0x1c   :  { %p781_p0 = por %p780_p13, %p779_p12 }
  0x1e   :  { %p782_p1 = pnand %p781_p0, %p775_p11 }
  0x20   :  { %785 = shalt.err (!%p782_p1)
}
  0x21   :  { %s794_s3 = smov 64   ;;  %s795_s28 = smov 4  }
  0x22   :  { %46 = dma.hbm_to_vmem [thread:$0]  %s895_s5, 2048, %s41_s20, [#allocation5], %s794_s3, %s794_s3, %s795_s28  }
  0x23   :  { %786 = dma.done.wait [#allocation3], 4096  }
  0x24   :  { %787 = vsyncadd [#allocation3], 4294963200 }
  0x25   :  { %788 = dma.done.wait [#allocation5], 2048  }
  0x26   :  { %789 = vsyncadd [#allocation5], 4294965248  ;;  %v796_v0 = vmov 0.0   ;;  %v60_v1 = vld [vmem:[%s891_s1 + $0x8] sm:$0xff]  ;;  %v59_v2 = vld [vmem:[%s891_s1] sm:$0xff]  ;;  %vm73_vm0 = vcmask 64512   ;;  %v63_v48 = vlaneseq }
  0x27   :  { %141 = vmatprep.mubr.f32.mxu0 %v796_v0  ;;  %v58_v3 = vld [vmem:[%s890_s0] sm:$0xff]  ;;  %77 = vmatprep.subr.mxu0 %v60_v1  ;;  %v679_v6 = vld [vmem:[#allocation2 + $0x14] ss:$8 sps:$4 sm:$0xff]   ;;  %v681_v7 = vld [vmem:[#allocation2 + $0x10] ss:$8 sps:$4 sm:$0xff]  }
  0x28   :  { %v676_v4 = vld [vmem:[#allocation2 + $0x4] ss:$8 sps:$4 sm:$0xff]   ;;  %78 = vmatpush1.msra.mxu0 %v59_v2  ;;  %v678_v5 = vld [vmem:[#allocation2] ss:$8 sps:$4 sm:$0xff]   ;;  %v685_v10 = vld [vmem:[#allocation2 + $0x34] ss:$8 sps:$4 sm:$0xff]  }
  0x29   :  { %596 = vmatmul.mubr.msk.f32.vlgmr.msra.gmra.mrb[0].mxu0 %vm73_vm0, %v58_v3  ;;  %356 = vmatprep.subr.bf16.mxu1 %v676_v4  ;;  %v682_v8 = vld [vmem:[#allocation2 + $0x24] ss:$8 sps:$4 sm:$0xff]   ;;  %v684_v9 = vld [vmem:[#allocation2 + $0x20] ss:$8 sps:$4 sm:$0xff]   ;;  %v687_v11 = vld [vmem:[#allocation2 + $0x30] ss:$8 sps:$4 sm:$0xff]  }
  0x2a   :  { %357 = vmatpush1.bf16.msra.mxu1 %v678_v5  ;;  %v688_v12 = vld [vmem:[#allocation2 + $0x44] ss:$8 sps:$4 sm:$0xff]   ;;  %v690_v13 = vld [vmem:[#allocation2 + $0x40] ss:$8 sps:$4 sm:$0xff]   ;;  %v691_v14 = vld [vmem:[#allocation2 + $0x54] ss:$8 sps:$4 sm:$0xff]  }
  0x2b   :  { %358 = vmatprep.subr.bf16.mxu1 %v679_v6  ;;  %v693_v15 = vld [vmem:[#allocation2 + $0x50] ss:$8 sps:$4 sm:$0xff]   ;;  %v694_v16 = vld [vmem:[#allocation2 + $0x64] ss:$8 sps:$4 sm:$0xff]   ;;  %v696_v17 = vld [vmem:[#allocation2 + $0x60] ss:$8 sps:$4 sm:$0xff]  }
  0x2c   :  { %v697_v18 = vld [vmem:[#allocation2 + $0x74] ss:$8 sps:$4 sm:$0xff]   ;;  %v699_v19 = vld [vmem:[#allocation2 + $0x70] ss:$8 sps:$4 sm:$0xff]   ;;  %v700_v20 = vld [vmem:[#allocation2 + $0x84] ss:$8 sps:$4 sm:$0xff]  }
  0x2d   :  { %v702_v21 = vld [vmem:[#allocation2 + $0x80] ss:$8 sps:$4 sm:$0xff]   ;;  %v703_v22 = vld [vmem:[#allocation2 + $0x94] ss:$8 sps:$4 sm:$0xff]   ;;  %v705_v23 = vld [vmem:[#allocation2 + $0x90] ss:$8 sps:$4 sm:$0xff]  }
  0x2e   :  { %359 = vmatpush1.bf16.msra.mxu1 %v681_v7  ;;  %v706_v24 = vld [vmem:[#allocation2 + $0xa4] ss:$8 sps:$4 sm:$0xff]   ;;  %v708_v25 = vld [vmem:[#allocation2 + $0xa0] ss:$8 sps:$4 sm:$0xff]   ;;  %v709_v26 = vld [vmem:[#allocation2 + $0xb4] ss:$8 sps:$4 sm:$0xff]  }
  0x2f   :  { %360 = vmatprep.subr.bf16.mxu1 %v682_v8  ;;  %v711_v27 = vld [vmem:[#allocation2 + $0xb0] ss:$8 sps:$4 sm:$0xff]   ;;  %v712_v28 = vld [vmem:[#allocation2 + $0xc4] ss:$8 sps:$4 sm:$0xff]   ;;  %v714_v29 = vld [vmem:[#allocation2 + $0xc0] ss:$8 sps:$4 sm:$0xff]  }
  0x30   :  { %v715_v30 = vld [vmem:[#allocation2 + $0xd4] ss:$8 sps:$4 sm:$0xff]   ;;  %v717_v31 = vld [vmem:[#allocation2 + $0xd0] ss:$8 sps:$4 sm:$0xff]   ;;  %v718_v32 = vld [vmem:[#allocation2 + $0xe4] ss:$8 sps:$4 sm:$0xff]  }
  0x31   :  { %v720_v33 = vld [vmem:[#allocation2 + $0xe0] ss:$8 sps:$4 sm:$0xff]   ;;  %v721_v34 = vld [vmem:[#allocation2 + $0xf4] ss:$8 sps:$4 sm:$0xff]   ;;  %v723_v35 = vld [vmem:[#allocation2 + $0xf0] ss:$8 sps:$4 sm:$0xff]  }
  0x32   :  { %361 = vmatpush1.bf16.msra.mxu1 %v684_v9  ;;  %v724_v36 = vld [vmem:[#allocation4 + $0x40] sm:$0xff]   ;;  %v726_v38 = vld [vmem:[#allocation4 + $0x48] sm:$0xff]   ;;  %v728_v40 = vld [vmem:[#allocation4 + $0x50] sm:$0xff]   ;;  %v64_v49 = vshrl.u32 %v63_v48, 7 }
  0x33   :  { %362 = vmatprep.subr.bf16.mxu1 %v685_v10  ;;  %v725_v37 = vld [vmem:[#allocation4] sm:$0xff]   ;;  %647 = vmatprep.subr.bf16.mxu0 %v724_v36  ;;  %v727_v39 = vld [vmem:[#allocation4 + $0x8] sm:$0xff]   ;;  %v729_v41 = vld [vmem:[#allocation4 + $0x10] sm:$0xff]  }
  0x34   :  { %648 = vmatpush3.bf16.msra.mxu0 %v725_v37  ;;  %v730_v42 = vld [vmem:[#allocation4 + $0x58] sm:$0xff]   ;;  %v732_v44 = vld [vmem:[#allocation4 + $0x60] sm:$0xff]   ;;  %v734_v46 = vld [vmem:[#allocation4 + $0x68] sm:$0xff]   ;;  %v65_v50 = vsub.s32 0, %v64_v49  ;;  %v69_v52 = vsub.s32 1, %v64_v49 }
  0x35   :  { %649 = vmatprep.subr.bf16.mxu0 %v726_v38  ;;  %v731_v43 = vld [vmem:[#allocation4 + $0x18] sm:$0xff]   ;;  %v733_v45 = vld [vmem:[#allocation4 + $0x20] sm:$0xff]   ;;  %v735_v47 = vld [vmem:[#allocation4 + $0x28] sm:$0xff]  }
  0x36   :  { %363 = vmatpush1.bf16.msra.mxu1 %v687_v11  ;;  %v61_v51 = vld [vmem:[%s892_s2] sm:$0x3]  ;;  %v736_v63 = vld [vmem:[#allocation4 + $0x70] sm:$0xff]   ;;  %v738_v1 = vld [vmem:[#allocation4 + $0x78] sm:$0xff]  }
  0x37   :  { %364 = vmatprep.subr.bf16.mxu1 %v688_v12  ;;  %v66_v53 = vrot.slane %v61_v51, %v65_v50  ;;  %v70_v54 = vrot.slane %v61_v51, %v69_v52  ;;  %v737_v0 = vld [vmem:[#allocation4 + $0x30] sm:$0xff]   ;;  %v739_v2 = vld [vmem:[#allocation4 + $0x38] sm:$0xff]   ;;  %v184_v3 = vld [vmem:[%s894_s4] sm:$0x3] }
  0x38   :  { %650 = vmatpush3.bf16.msra.mxu0 %v727_v39  ;;  %v189_v4 = vrot.slane %v184_v3, %v65_v50  ;;  %v193_v5 = vrot.slane %v184_v3, %v69_v52 }
  0x39   :  { %651 = vmatprep.subr.bf16.mxu0 %v728_v40 }
  0x3a   :  { %365 = vmatpush1.bf16.msra.mxu1 %v690_v13 }
  0x3b   :  { %366 = vmatprep.subr.bf16.mxu1 %v691_v14 }
  0x3c   :  { %652 = vmatpush3.bf16.msra.mxu0 %v729_v41 }
  0x3d   :  { %653 = vmatprep.subr.bf16.mxu0 %v730_v42 }
  0x3e   :  { %367 = vmatpush1.bf16.msra.mxu1 %v693_v15 }
  0x3f   :  { %368 = vmatprep.subr.bf16.mxu1 %v694_v16 }
  0x40   :  { %654 = vmatpush3.bf16.msra.mxu0 %v731_v43 }
  0x41   :  { %655 = vmatprep.subr.bf16.mxu0 %v732_v44 }
  0x42   :  { %369 = vmatpush1.bf16.msra.mxu1 %v696_v17  ;;  %v629_v17 = vld [vmem:[%s896_s6] ss:$0 sm:$0xff] }
  0x43   :  { %370 = vmatprep.subr.bf16.mxu1 %v697_v18 }
  0x44   :  { %656 = vmatpush3.bf16.msra.mxu0 %v733_v45 }
  0x45   :  { %657 = vmatprep.subr.bf16.mxu0 %v734_v46 }
  0x46   :  { %371 = vmatpush1.bf16.msra.mxu1 %v699_v19 }
  0x47   :  { %372 = vmatprep.subr.bf16.mxu1 %v700_v20 }
  0x48   :  { %658 = vmatpush3.bf16.msra.mxu0 %v735_v47 }
  0x49   :  { %659 = vmatprep.subr.bf16.mxu0 %v736_v63 }
  0x4a   :  { %373 = vmatpush1.bf16.msra.mxu1 %v702_v21 }
  0x4b   :  { %374 = vmatprep.subr.bf16.mxu1 %v703_v22 }
  0x4c   :  { %660 = vmatpush3.bf16.msra.mxu0 %v737_v0 }
  0x4d   :  { %661 = vmatprep.subr.bf16.mxu0 %v738_v1 }
  0x4e   :  { %375 = vmatpush1.bf16.msra.mxu1 %v705_v23 }
  0x4f   :  { %376 = vmatprep.subr.bf16.mxu1 %v706_v24 }
  0x50   :  { %662 = vmatpush3.bf16.msra.mxu0 %v739_v2 }
  0x52   :  { %377 = vmatpush1.bf16.msra.mxu1 %v708_v25 }
  0x53   :  { %378 = vmatprep.subr.bf16.mxu1 %v709_v26  ;;  %v646_v26 = vld [vmem:[%s897_s7] ss:$0 sm:$0xff] }
  0x54   :  { %vm587_vm1 = vcmp.ne.f32.partialorder %v646_v26, 0.0 }
  0x56   :  { %379 = vmatpush1.bf16.msra.mxu1 %v711_v27 }
  0x57   :  { %380 = vmatprep.subr.bf16.mxu1 %v712_v28 }
  0x5a   :  { %381 = vmatpush1.bf16.msra.mxu1 %v714_v29 }
  0x5b   :  { %382 = vmatprep.subr.bf16.mxu1 %v715_v30 }
  0x5e   :  { %383 = vmatpush1.bf16.msra.mxu1 %v717_v31 }
  0x5f   :  { %384 = vmatprep.subr.bf16.mxu1 %v718_v32 }
  0x62   :  { %385 = vmatpush1.bf16.msra.mxu1 %v720_v33 }
  0x63   :  { %386 = vmatprep.subr.bf16.mxu1 %v721_v34 }
  0x66   :  { %387 = vmatpush1.bf16.msra.mxu1 %v723_v35 }
  0xfc   :  { %v143_v55 = vpop.f32.mrb[0].mxu0 }
  0xfd   :  { %v144_v56 = vadd.f32 %v143_v55, %v66_v53  ;;  %v145_v57 = vpop.f32.mrb[1].mxu0 }
  0xfe   :  { %v146_v58 = vadd.f32 %v145_v57, %v70_v54 }
  0xff   :  { %v148_v59 = vmax.f32 %v144_v56, 0.0 }
 0x100   :  { %v149_v60 = vmax.f32 %v146_v58, 0.0 }
 0x101   :  { %v150_v62 = vpack.c.bf16 %v148_v59, %v148_v59 }
 0x102   :  { %v151_v61 = vpack.c.bf16 %v149_v60, %v149_v60 }
 0x104   :  { %388 = vmatprep.mubr.bf16.mxu1 %v151_v61 }
 0x105   :  { %389 = vmatmul.mubr.bf16.vlgmr.msra.gmra.mrb[0].mxu1 %v150_v62 }
 0x1d8   :  { %v390_v6 = vpop.f32.mrb[0].mxu1 }
 0x1d9   :  { %v391_v7 = vadd.f32 %v390_v6, %v189_v4  ;;  %v392_v8 = vpop.f32.mrb[1].mxu1 }
 0x1da   :  { %v393_v9 = vadd.f32 %v392_v8, %v193_v5  ;;  %v394_v10 = vpop.f32.mrb[2].mxu1 }
 0x1db   :  { %v397_v11 = vmax.f32 %v391_v7, 0.0  ;;  %v395_v12 = vpop.f32.mrb[3].mxu1 }
 0x1dc   :  { %v398_v13 = vmax.f32 %v393_v9, 0.0 }
 0x1dd   :  { %v399_v15 = vpack.c.bf16 %v397_v11, %v397_v11 }
 0x1de   :  { %v400_v14 = vpack.c.bf16 %v398_v13, %v398_v13 }
 0x1e0   :  { %568 = vmatprep.mubr.bf16.mxu0 %v400_v14 }
 0x1e1   :  { %569 = vmatmul.mubr.bf16.vlgmr.msra.gmra.mrb[4].mxu0 %v399_v15 }
 0x2b4   :  { %v663_v16 = vpop.f32.mrb[4].mxu0 }
 0x2b5   :  { %v664_v18 = vpop.f32.mrb[5].mxu0 }
 0x2b6   :  { %v665_v19 = vadd.f32 %v664_v18, %v663_v16  ;;  %v666_v20 = vpop.f32.mrb[6].mxu0 }
 0x2b7   :  { %v667_v21 = vpop.f32.mrb[7].mxu0 }
 0x2b8   :  { %v571_v22 = vadd.f32 %v665_v19, %v629_v17 }
 0x2ba   :  { %v576_v23 = vmax.f32 %v571_v22, -20.0 }
 0x2bc   :  { %v577_v24 = vmin.f32 %v576_v23, 2.0 }
 0x2be   :  { %v578_v25 = vmul.f32 1.442695, %v577_v24 }
 0x2c0   :  { %740 = vpow2.f32 %v578_v25 }
 0x2ca   :  { %v741_v27 = vpop.eup %740 }
 0x2cb   :  { %v588_v28 = vsel %vm587_vm1, %v741_v27, %v571_v22 }
 0x2cc   :  { %589 = vst [vmem:[%s898_s8] sm:$0xff] %v588_v28 }
 0x2cd   :  { %594 = vsyncpa [#allocation3], 1 }
 0x2ce   :  { %595 = vsyncpa [#allocation5], 1 }

</bundles_post_ra>
